<compile_context>
chip_gen: v5e
topology: v5e:2x2
jax: 0.10.0
libtpu: 0.0.40
codegen_flags: <defaults>
</compile_context>

<pallas_src>
import jax
import jax.numpy as jnp
from jax.experimental import pallas as pl
from jax.experimental.pallas import tpu as pltpu


def _pos_kernel(x_ref, w_ref, b_ref, o_ref):
    # Hot path: matmul on the MXU, bias add (VPU) + tanh (EUP).
    acc = jnp.dot(x_ref[...], w_ref[...], preferred_element_type=jnp.float32)
    o_ref[...] = jnp.tanh(acc + b_ref[...])


def _choose_tile_b(B: int) -> int:
    """Pick a batch tile: big enough to amortize per-step overhead, but keep
    >=2 grid steps for mid/large batches so v7x's 2 TensorCores both work."""
    MAX_TILE = 4096
    if B > MAX_TILE:
        return MAX_TILE                      # grid >= 2 steps automatically
    if B >= 2048:
        # Split roughly in half, rounded up to a multiple of 128 (sublane/MXU
        # friendly); trailing partial block is handled by masked writes.
        half = -(-B // 2)
        return ((half + 127) // 128) * 128
    return B                                  # single full-array block (legal)


def pos_forward(x, w, b):
    """tanh(x @ w + b) via a batch-gridded Pallas TPU kernel.

    x: (B, K) float32
    w: (K, N) float32
    b: (N,)   float32
    returns (B, N) float32
    """
    x = x.astype(jnp.float32)
    w = w.astype(jnp.float32)
    b = b.astype(jnp.float32)

    B, K = x.shape
    Kw, N = w.shape
    assert K == Kw and b.shape == (N,)

    b2 = b.reshape(1, N)

    tile_b = _choose_tile_b(B)
    grid = (pl.cdiv(B, tile_b),)

    cost = pl.CostEstimate(
        flops=2 * B * K * N,
        transcendentals=B * N,
        bytes_accessed=(x.size + w.size + b2.size + B * N) * 4,
    )

    out = pl.pallas_call(
        _pos_kernel,
        out_shape=jax.ShapeDtypeStruct((B, N), jnp.float32),
        grid=grid,
        in_specs=[
            # x tile marches down the batch; K=250 is the full dim (no padding).
            pl.BlockSpec((tile_b, K), lambda i: (i, 0)),
            # Weight / bias: constant index_map -> VMEM-resident across steps.
            pl.BlockSpec((K, N), lambda i: (0, 0)),
            pl.BlockSpec((1, N), lambda i: (0, 0)),
        ],
        # Last block dim == full array dim (36): legal, unpadded writeback.
        out_specs=pl.BlockSpec((tile_b, N), lambda i: (i, 0)),
        compiler_params=pltpu.CompilerParams(
            dimension_semantics=("parallel",),   # shards batch across v7x's 2 TCs
            vmem_limit_bytes=32 << 20,           # explicit headroom for big tiles
        ),
        cost_estimate=cost,
    )(x, w, b2)

    return out


if __name__ == "__main__":
    key = jax.random.PRNGKey(0)
    k_x, k_w, k_b = jax.random.split(key, 3)

    B, K, N = 8, 250, 36  # batch=8, in_features=250, out_features=36

    x = jax.random.normal(k_x, (B, K), dtype=jnp.float32)
    w00 = jax.random.normal(k_w, (K, N), dtype=jnp.float32)  # torch.randn((250, 36))
    b00 = jax.random.normal(k_b, (N,), dtype=jnp.float32)    # torch.randn(36)

    out = pos_forward(x, w00, b00)
    jax.block_until_ready(out)

    # Sanity check against plain JAX reference.
    ref = jnp.tanh(x @ w00 + b00)
    assert out.shape == (B, N)
    assert jnp.allclose(out, ref, atol=1e-5, rtol=1e-5)

    print("KERNEL_OK")
</pallas_src>

<mosaic_0001>
module attributes {stable_mosaic.version = 11 : i64} {
  func.func @_pos_kernel(%arg0: i32, %arg1: memref<8x250xf32, #tpu.memory_space<vmem>>, %arg2: memref<250x36xf32, #tpu.memory_space<vmem>>, %arg3: memref<1x36xf32, #tpu.memory_space<vmem>>, %arg4: memref<8x36xf32, #tpu.memory_space<vmem>>) attributes {dimension_semantics = [#tpu.dimension_semantics<parallel>], iteration_bounds = array<i64: 1>, scalar_prefetch = 0 : i64, scratch_operands = 0 : i64, tpu.core_type = #tpu.core_type<tc>, window_params = [{transform_indices = @transform_0, window_bounds = array<i64: 8, 250>}, {pipeline_mode = #tpu.pipeline_mode<synchronous>, transform_indices = @transform_1, window_bounds = array<i64: 250, 36>}, {pipeline_mode = #tpu.pipeline_mode<synchronous>, transform_indices = @transform_2, window_bounds = array<i64: 1, 36>}, {transform_indices = @transform_3, window_bounds = array<i64: 8, 36>}]} {
    %c0 = arith.constant 0 : index
    %c0_0 = arith.constant 0 : index
    %0 = vector.load %arg1[%c0, %c0_0] : memref<8x250xf32, #tpu.memory_space<vmem>>, vector<8x250xf32>
    %c0_1 = arith.constant 0 : index
    %c0_2 = arith.constant 0 : index
    %1 = vector.load %arg2[%c0_1, %c0_2] : memref<250x36xf32, #tpu.memory_space<vmem>>, vector<250x36xf32>
    %cst = arith.constant dense<0.000000e+00> : vector<8x36xf32>
    %2 = tpu.matmul %0, %1, %cst {dimension_numbers = #tpu.dot_dimension_numbers<[1], [0], [0], [1], [0, 0, 1, 1], [], []>} : vector<8x250xf32>, vector<250x36xf32>, vector<8x36xf32> -> vector<8x36xf32>
    %c0_3 = arith.constant 0 : index
    %c0_4 = arith.constant 0 : index
    %3 = vector.load %arg3[%c0_3, %c0_4] : memref<1x36xf32, #tpu.memory_space<vmem>>, vector<1x36xf32>
    %4 = vector.broadcast %3 : vector<1x36xf32> to vector<8x36xf32>
    %5 = arith.addf %2, %4 : vector<8x36xf32>
    %6 = math.tanh %5 : vector<8x36xf32>
    %c0_5 = arith.constant 0 : index
    %c0_6 = arith.constant 0 : index
    %7 = vector.load %arg4[%c0_5, %c0_6] : memref<8x36xf32, #tpu.memory_space<vmem>>, vector<8x36xf32>
    tpu.vector_store %arg4[%c0_5, %c0_6], %6 {strides = array<i32>} : memref<8x36xf32, #tpu.memory_space<vmem>>, vector<8x36xf32>,
    return
  }
  func.func @transform_0(%arg0: i32) -> (i32, i32) {
    %c0_i32 = arith.constant 0 : i32
    %c0_i32_0 = arith.constant 0 : i32
    return %arg0, %c0_i32 : i32, i32
  }
  func.func @transform_1(%arg0: i32) -> (i32, i32) {
    %c0_i32 = arith.constant 0 : i32
    %c0_i32_0 = arith.constant 0 : i32
    %c0_i32_1 = arith.constant 0 : i32
    return %c0_i32, %c0_i32_0 : i32, i32
  }
  func.func @transform_2(%arg0: i32) -> (i32, i32) {
    %c0_i32 = arith.constant 0 : i32
    %c0_i32_0 = arith.constant 0 : i32
    %c0_i32_1 = arith.constant 0 : i32
    return %c0_i32, %c0_i32_0 : i32, i32
  }
  func.func @transform_3(%arg0: i32) -> (i32, i32) {
    %c0_i32 = arith.constant 0 : i32
    %c0_i32_0 = arith.constant 0 : i32
    return %arg0, %c0_i32 : i32, i32
  }
}

</mosaic_0001>

<bundles_post_ra>
// kernel: tpu_custom_call.1
= control target key start
LH: loop header
LB: loop body
LE: loop exit
PB: predicated region body
PF: predicated region fallthrough
CT: control target
= control target key end

     0   :  { %vm57_vm0 = vcmask 1041408   ;;  %s281_s0 = inlined_call_operand.vmem [shape: f32[8,250], index: 0, kind: input, shape index: {}]   ;;  %s282_s1 = inlined_call_operand.vmem [shape: f32[250,36], index: 1, kind: input, shape index: {}]   ;;  %s283_s2 = inlined_call_operand.vmem [shape: f32[1,36], index: 2, kind: input, shape index: {}]   ;;  %s284_s3 = inlined_call_operand.hbm [shape: f32[8,36], index: 3, kind: output, shape index: {}]  }
   0x1   :  { %v32_v0 = vld [vmem:[%s282_s1 + $0x78] sm:$0xff]  ;;  %v31_v1 = vld [vmem:[%s282_s1 + $0x70] sm:$0xff]  ;;  %v30_v4 = vld [vmem:[%s282_s1 + $0x68] sm:$0xff] }
   0x2   :  { %v48_v2 = vld [vmem:[%s282_s1 + $0xf8] sm:$0x3]  ;;  %61 = vmatpush.msra.mxu0 %v32_v0  ;;  %v47_v3 = vld [vmem:[%s282_s1 + $0xf0] sm:$0xff]  ;;  %v46_v5 = vld [vmem:[%s282_s1 + $0xe8] sm:$0xff] }
   0x3   :  { %120 = vmatpush.msk.msra.mxu1 %vm57_vm0, %v48_v2  ;;  %v29_v6 = vld [vmem:[%s282_s1 + $0x60] sm:$0xff]  ;;  %v28_v8 = vld [vmem:[%s282_s1 + $0x58] sm:$0xff]  ;;  %v27_v10 = vld [vmem:[%s282_s1 + $0x50] sm:$0xff] }
   0x4   :  { %62 = vmatpush.msra.mxu0 %v31_v1  ;;  %v45_v7 = vld [vmem:[%s282_s1 + $0xe0] sm:$0xff]  ;;  %v44_v9 = vld [vmem:[%s282_s1 + $0xd8] sm:$0xff]  ;;  %v43_v11 = vld [vmem:[%s282_s1 + $0xd0] sm:$0xff] }
   0x5   :  { %82 = vmatpush.msra.mxu1 %v47_v3  ;;  %v26_v12 = vld [vmem:[%s282_s1 + $0x48] sm:$0xff]  ;;  %v25_v14 = vld [vmem:[%s282_s1 + $0x40] sm:$0xff] }
   0x6   :  { %63 = vmatpush.msra.mxu0 %v30_v4  ;;  %v42_v13 = vld [vmem:[%s282_s1 + $0xc8] sm:$0xff]  ;;  %v41_v15 = vld [vmem:[%s282_s1 + $0xc0] sm:$0xff] }
   0x7   :  { %83 = vmatpush.msra.mxu1 %v46_v5 }
   0x8   :  { %64 = vmatpush.msra.mxu0 %v29_v6 }
   0x9   :  { %84 = vmatpush.msra.mxu1 %v45_v7 }
   0xa   :  { %65 = vmatpush.msra.mxu0 %v28_v8 }
   0xb   :  { %85 = vmatpush.msra.mxu1 %v44_v9 }
   0xc   :  { %66 = vmatpush.msra.mxu0 %v27_v10 }
   0xd   :  { %86 = vmatpush.msra.mxu1 %v43_v11 }
   0xe   :  { %8 = vsyncpa [#allocation3], 0  ;;  %67 = vmatpush.msra.mxu0 %v26_v12  ;;  %v24_v16 = vld [vmem:[%s282_s1 + $0x38] sm:$0xff]  ;;  %v23_v18 = vld [vmem:[%s282_s1 + $0x30] sm:$0xff]  ;;  %vm53_vm1 = vcmask 998400   ;;  %vm102_vm2 = vcmask 293888  }
   0xf   :  { %87 = vmatpush.msra.mxu1 %v42_v13  ;;  %v40_v17 = vld [vmem:[%s282_s1 + $0xb8] sm:$0xff]  ;;  %v39_v19 = vld [vmem:[%s282_s1 + $0xb0] sm:$0xff]  ;;  %v22_v20 = vld [vmem:[%s282_s1 + $0x28] sm:$0xff] }
  0x10   :  { %68 = vmatpush.msra.mxu0 %v25_v14  ;;  %v38_v21 = vld [vmem:[%s282_s1 + $0xa8] sm:$0xff]  ;;  %v21_v22 = vld [vmem:[%s282_s1 + $0x20] sm:$0xff]  ;;  %v20_v24 = vld [vmem:[%s282_s1 + $0x18] sm:$0xff] }
  0x11   :  { %88 = vmatpush.msra.mxu1 %v41_v15  ;;  %v37_v23 = vld [vmem:[%s282_s1 + $0xa0] sm:$0xff]  ;;  %v36_v25 = vld [vmem:[%s282_s1 + $0x98] sm:$0xff]  ;;  %v19_v26 = vld [vmem:[%s282_s1 + $0x10] sm:$0xff] }
  0x12   :  { %69 = vmatpush.msra.mxu0 %v24_v16  ;;  %v35_v27 = vld [vmem:[%s282_s1 + $0x90] sm:$0xff]  ;;  %v18_v28 = vld [vmem:[%s282_s1 + $0x8] sm:$0xff]  ;;  %v17_v30 = vld [vmem:[%s282_s1] sm:$0xff] }
  0x13   :  { %89 = vmatpush.msra.mxu1 %v40_v17  ;;  %v34_v29 = vld [vmem:[%s282_s1 + $0x88] sm:$0xff]  ;;  %v33_v31 = vld [vmem:[%s282_s1 + $0x80] sm:$0xff]  ;;  %s152_s1 = smov [#allocation2]  }
  0x14   :  { %70 = vmatpush.msra.mxu0 %v23_v18  ;;  %v15_v32 = vld [vmem:[%s281_s0] sm:$0xff]  ;;  %v16_v33 = vld [vmem:[%s281_s0 + $0x8] sm:$0xff]  ;;  %s109_s28 = sshll.u32 %s152_s1, 4  ;;  %s111_s0 = sshll.u32 %s284_s3, 4  ;;  %s110_s28 = int_to_ptr.vmem [resolvable:$true] %s109_s28  ;;  %s112_s0 = int_to_ptr.hbm [resolvable:$true] %s111_s0 }
  0x15   :  { %90 = vmatpush.msra.mxu1 %v39_v19  ;;  %v123_v34 = vld [vmem:[%s283_s2] ss:$0 sm:$0xff] }
  0x16   :  { %71 = vmatpush.msra.mxu0 %v22_v20 }
  0x17   :  { %91 = vmatpush.msra.mxu1 %v38_v21 }
  0x18   :  { %72 = vmatpush.msra.mxu0 %v21_v22 }
  0x19   :  { %92 = vmatpush.msra.mxu1 %v37_v23 }
  0x1a   :  { %73 = vmatpush.msra.mxu0 %v20_v24 }
  0x1b   :  { %93 = vmatpush.msra.mxu1 %v36_v25 }
  0x1c   :  { %74 = vmatpush.msra.mxu0 %v19_v26 }
  0x1d   :  { %94 = vmatpush.msra.mxu1 %v35_v27 }
  0x1e   :  { %75 = vmatpush.msra.mxu0 %v18_v28 }
  0x1f   :  { %95 = vmatpush.msra.mxu1 %v34_v29 }
  0x20   :  { %76 = vmatpush.msra.mxu0 %v17_v30 }
  0x21   :  { %96 = vmatpush.msra.mxu1 %v33_v31  ;;  %77 = vmatmul.f32.vlgmr.msra.gmra.mxu0 %v15_v32 }
  0x22   :  { %121 = vmatmul.msk.f32.vlgmr.msra.gmra.mxu1 %vm53_vm1, %v16_v33 }
  0x9e   :  { %v78_v35 = vpop.f32.mrf.mxu0 }
  0x9f   :  { %v98_v36 = vpop.f32.mrf.mxu1  ;;  %v79_v37 = vadd.f32 %v123_v34, %v78_v35 }
  0xa1   :  { %v99_v38 = vadd.f32 %v98_v36, %v79_v37 }
  0xa3   :  { %124 = vtanh.f32 %v99_v38 }
  0xa9   :  { %v125_v39 = vpop.eup %124 }
  0xaa   :  { %103 = vst.msk [vmem:[#allocation2] sm:$0xff] %vm102_vm2, %v125_v39 }
  0xab   :  { %114 = dma.vmem_to_hbm [thread:$0]  %s110_s28, 128, %s112_s0, [#allocation3]  }
  0xac   :  { %150 = dma.done.wait [#allocation3], 128  }
  0xad   :  { %151 = vsyncadd [#allocation3], 4294967168 }
  0xae   :  { %119 = vsyncpa [#allocation3], 1 }

</bundles_post_ra>
